<compile_context>
chip_gen: v6e
topology: v6e:2x2x1
jax: 0.10.0
libtpu: 0.0.40
codegen_flags: <defaults>
</compile_context>

<pallas_src>
import functools

import jax
import jax.numpy as jnp
import numpy as np
from jax import lax
from jax.experimental import pallas as pl
from jax.experimental.pallas import tpu as pltpu


# ---------------------------------------------------------------------------
# Generation-aware VMEM budget.
# ---------------------------------------------------------------------------
def _vmem_capacity_bytes():
    try:
        info = pltpu.get_tpu_info()
        cap = getattr(info, "vmem_capacity_bytes", None)
        if cap:
            return int(cap)
    except Exception:
        pass
    return 64 * 1024 * 1024  # conservative fallback (v7x per-TC VMEM)


def _vmem_limit_bytes():
    # <= 48 MiB scoped on v7x (64 MiB physical), up to 96 MiB on v5e/v6e.
    return int(min(_vmem_capacity_bytes() * 3 // 4, 96 * 1024 * 1024))


# ---------------------------------------------------------------------------
# Kernel 1: fused Linear + ReLU,  y = relu(x @ W^T + b), row-tiled.
# ---------------------------------------------------------------------------
def _linear_relu_kernel(x_ref, w_ref, b_ref, o_ref):
    y = jnp.dot(x_ref[...], w_ref[...], preferred_element_type=jnp.float32)
    o_ref[...] = jnp.maximum(y + b_ref[...], 0.0)


def linear_relu(x, w, b, *, row_tile=256, vmem_limit=None):
    """x: (M, d_in), w: (d_out, d_in) PyTorch-style Linear weight, b: (d_out,)."""
    if vmem_limit is None:
        vmem_limit = _vmem_limit_bytes()
    m, d_in = x.shape
    d_out = w.shape[0]

    # One-time (d_out, d_in) -> (d_in, d_out) relayout of the resident weight
    # so the kernel is a standard (M,K)x(K,N) contraction (no per-tile vxpose).
    w_t = jnp.asarray(w, jnp.float32).T
    b_row = jnp.asarray(b, jnp.float32).reshape(1, d_out)

    # Always tile: pad M so every block is a multiple-of-8 row tile.
    tm = min(((row_tile + 7) // 8) * 8, ((m + 7) // 8) * 8)
    m_pad = ((m + tm - 1) // tm) * tm
    x_in = x if m_pad == m else jnp.pad(x, ((0, m_pad - m), (0, 0)))

    y = pl.pallas_call(
        _linear_relu_kernel,
        out_shape=jax.ShapeDtypeStruct((m_pad, d_out), jnp.float32),
        grid=(m_pad // tm,),
        in_specs=[
            pl.BlockSpec((tm, d_in), lambda i: (i, 0)),
            pl.BlockSpec((d_in, d_out), lambda i: (0, 0)),  # constant -> resident
            pl.BlockSpec((1, d_out), lambda i: (0, 0)),
        ],
        out_specs=pl.BlockSpec((tm, d_out), lambda i: (i, 0)),
        compiler_params=pltpu.CompilerParams(
            dimension_semantics=("parallel",),
            vmem_limit_bytes=vmem_limit,
        ),
    )(x_in, w_t, b_row)
    return y[:m] if m_pad != m else y


# ---------------------------------------------------------------------------
# Kernel 2: streaming bilinear attention core.
#
# Head-major layout: the wrapper presents per-batch slabs X2[i, h*dk + k] so
# the lane axis is the full d, and Sq[h*dk+k, h'] = q[k]*delta(h,h') turns the
# per-head q-weighted k-reduction into an MXU matmul.
# ---------------------------------------------------------------------------
def _bilinear_attn_kernel(a2_ref, b2_ref, sq_ref, tb2a_ref, ta2b_ref,
                          rowsum_ref, col_acc_ref, colsum_ref,
                          *, la_true, lb_true, group):
    j = pl.program_id(1)
    n_j = pl.num_programs(1)
    la_pad = a2_ref.shape[0]
    lb_t = b2_ref.shape[0]
    n_groups = la_pad // group

    @pl.when(j == 0)
    def _init():
        rowsum_ref[...] = jnp.zeros_like(rowsum_ref)

    # Per-chunk column-sum accumulator.
    col_acc_ref[...] = jnp.zeros_like(col_acc_ref)
    b2 = b2_ref[...]                                           # (lb_t, d)

    # Single pass over La in sublane groups: each small tanh group is reduced
    # immediately into the row/column accumulators (no big chunk materialized).
    if n_groups <= 8:
        for g in range(n_groups):                              # static offsets
            r0 = g * group
            a_g = a2_ref[r0:r0 + group, :]                     # (group, d)
            tg = jnp.tanh(a_g[:, None, :] * b2[None, :, :])    # (group, lb_t, d)
            col_acc_ref[...] += jnp.sum(tg, axis=0, dtype=jnp.float32)
            rowsum_ref[r0:r0 + group, :] += jnp.sum(tg, axis=1, dtype=jnp.float32)
    else:
        def body(g, carry):
            r0 = pl.multiple_of(g * group, group)
            a_g = a2_ref[pl.ds(r0, group), :]
            tg = jnp.tanh(a_g[:, None, :] * b2[None, :, :])
            col_acc_ref[...] += jnp.sum(tg, axis=0, dtype=jnp.float32)
            rowsum_ref[pl.ds(r0, group), :] += jnp.sum(tg, axis=1, dtype=jnp.float32)
            return carry
        lax.fori_loop(0, n_groups, body, 0)

    # Per-head q-weighted k-reduction of this chunk's column sums (MXU).
    cs = lax.dot_general(col_acc_ref[...], sq_ref[...],
                         (((1,), (0,)), ((), ())),
                         preferred_element_type=jnp.float32)   # (lb_t, H)
    if colsum_ref.shape[0] == lb_t:
        colsum_ref[...] = cs
    else:
        start = pl.multiple_of(j * lb_t, 8)
        colsum_ref[pl.ds(start, lb_t), :] = cs

    @pl.when(j == n_j - 1)
    def _finalize():
        rs = lax.dot_general(rowsum_ref[...], sq_ref[...],
                             (((1,), (0,)), ((), ())),
                             preferred_element_type=jnp.float32)  # (la_pad, H)

        def masked_softmax(x, n_valid):
            if n_valid < x.shape[0]:
                rows = lax.broadcasted_iota(jnp.int32, x.shape, 0)
                x = jnp.where(rows < n_valid, x, -1e30)
            x = x - jnp.max(x, axis=0, keepdims=True)
            e = jnp.exp(x)
            return e / jnp.sum(e, axis=0, keepdims=True)

        tb2a_ref[...] = masked_softmax(rs * (1.0 / lb_true), la_true)
        ta2b_ref[...] = masked_softmax(colsum_ref[...] * (1.0 / la_true), lb_true)


def _pick_lb_tile(la_pad, lb, d, h, group, vmem_limit):
    """Largest Lb chunk whose *total* residency (double-buffered B2 chunk,
    resident A2, scratch accumulators, transient tanh group) fits the
    generation-aware VMEM budget."""
    bpe = 4
    fixed = (3 * la_pad * d          # A2 (x2 double-buffered) + rowsum scratch
             + 2 * d * h             # Sq
             + 2 * la_pad * h        # t_b2a output block
             + 3 * lb * h            # t_a2b output block + colsum scratch
             ) * bpe
    per_row = (3 + group) * d * bpe  # B2 x2 + col_acc + transient tanh group
    budget = max(vmem_limit // 2 - fixed, 8 * per_row)
    if lb * per_row <= budget:
        return lb                    # single chunk, no Lb padding needed
    # TODO(synk): add an La-chunk grid axis if `fixed` alone exceeds the budget.
    return max(8, (budget // per_row) // 8 * 8)


def bilinear_attention(A, B, W1, b1, W2, b2, q, num_heads, *,
                       max_lb_tile=None, row_tile=256,
                       compute_dtype=jnp.float32):
    batch, La, d = A.shape
    Lb = B.shape[1]
    assert d % num_heads == 0
    H = num_heads
    dk = d // H

    vmem_limit = _vmem_limit_bytes()

    # Linear + ReLU projections (row-tiled Pallas matmul kernel).
    A_lin = linear_relu(A.reshape(batch * La, d), W1, b1,
                        row_tile=row_tile, vmem_limit=vmem_limit).reshape(batch, La, d)
    B_lin = linear_relu(B.reshape(batch * Lb, d), W2, b2,
                        row_tile=row_tile, vmem_limit=vmem_limit).reshape(batch, Lb, d)

    # Raw PyTorch `.view(batch, H, L, dk)` reshape, then move heads next to dk
    # so the kernel sees lane-dense (L, d) slabs with column index h*dk + k.
    def to_head_major(x, L):
        return x.reshape(batch, H, L, dk).transpose(0, 2, 1, 3).reshape(batch, L, d)

    A2 = to_head_major(A_lin, La).astype(compute_dtype)
    B2 = to_head_major(B_lin, Lb).astype(compute_dtype)

    # La sublane-group size; pad A2 with zero rows (they contribute tanh(0)=0
    # to the column sums and their row sums are masked out in the softmax).
    if La <= 8:
        G, La_pad = La, La
    else:
        G, La_pad = 8, ((La + 7) // 8) * 8
    if La_pad != La:
        A2 = jnp.pad(A2, ((0, 0), (0, La_pad - La), (0, 0)))

    # Lb chunk size from the VMEM budget (optionally capped, e.g. for tests).
    lb_t = _pick_lb_tile(La_pad, Lb, d, H, G, vmem_limit)
    if max_lb_tile is not None:
        lb_t = min(lb_t, max(8, (max_lb_tile // 8) * 8))
    if lb_t >= Lb:
        lb_t, Lb_pad = Lb, Lb
    else:
        Lb_pad = ((Lb + lb_t - 1) // lb_t) * lb_t
        if Lb_pad != Lb:
            B2 = jnp.pad(B2, ((0, 0), (0, Lb_pad - Lb), (0, 0)))
    n_j = Lb_pad // lb_t

    # Sq[h*dk+k, h'] = q[k] * delta(h, h')  -> per-head k-reduction as a matmul.
    Sq = (jnp.repeat(jnp.eye(H, dtype=jnp.float32), dk, axis=0)
          * jnp.tile(q.astype(jnp.float32), H)[:, None])          # (d, H)

    kernel = functools.partial(_bilinear_attn_kernel,
                               la_true=La, lb_true=Lb, group=G)

    t_b2a_pad, t_a2b_pad = pl.pallas_call(
        kernel,
        out_shape=(jax.ShapeDtypeStruct((batch, La_pad, H), jnp.float32),
                   jax.ShapeDtypeStruct((batch, Lb_pad, H), jnp.float32)),
        grid=(batch, n_j),
        in_specs=[
            pl.BlockSpec((None, La_pad, d), lambda b, jj: (b, 0, 0)),   # A2 (resident)
            pl.BlockSpec((None, lb_t, d), lambda b, jj: (b, jj, 0)),    # B2 chunk
            pl.BlockSpec((d, H), lambda b, jj: (0, 0)),                 # Sq
        ],
        out_specs=[
            pl.BlockSpec((None, La_pad, H), lambda b, jj: (b, 0, 0)),
            pl.BlockSpec((None, Lb_pad, H), lambda b, jj: (b, 0, 0)),
        ],
        scratch_shapes=[
            pltpu.VMEM((La_pad, d), jnp.float32),   # running row sums (b2a side)
            pltpu.VMEM((lb_t, d), jnp.float32),     # per-chunk column-sum acc
            pltpu.VMEM((Lb_pad, H), jnp.float32),   # per-head column sums (a2b)
        ],
        compiler_params=pltpu.CompilerParams(
            dimension_semantics=("parallel", "arbitrary"),
            vmem_limit_bytes=vmem_limit,
        ),
    )(A2, B2, Sq)

    # Tiny XLA consumers: head-mean + attention-weighted pooling of raw inputs
    # (keeps the full raw (L, d) slabs out of the streaming kernel's VMEM).
    t_b2a = t_b2a_pad[:, :La, :]                         # (batch, La, H)
    t_a2b = t_a2b_pad[:, :Lb, :]                         # (batch, Lb, H)
    b2a = jnp.mean(t_b2a, axis=2)
    a2b = jnp.mean(t_a2b, axis=2)
    A_p = jnp.einsum("bhik,bih->bhk",
                     A.reshape(batch, H, La, dk), t_b2a).reshape(batch, d)
    B_p = jnp.einsum("bhjk,bjh->bhk",
                     B.reshape(batch, H, Lb, dk), t_a2b).reshape(batch, d)
    fused = jnp.concatenate([A_p, B_p], axis=1)
    return fused, b2a, a2b


# ---------------------------------------------------------------------------
# Pure-JAX reference (mirrors the PyTorch forward exactly) for validation.
# ---------------------------------------------------------------------------
def reference(A, B, W1, b1, W2, b2, q, num_heads):
    batch, La, d = A.shape
    Lb = B.shape[1]
    dk = d // num_heads
    A_ = jax.nn.relu(A @ W1.T + b1).reshape(batch, num_heads, La, dk)
    B_ = jax.nn.relu(B @ W2.T + b2).reshape(batch, num_heads, Lb, dk)
    att = jnp.einsum(
        "bhijk,k->bhij",
        jnp.tanh(A_[:, :, :, None, :] * B_[:, :, None, :, :]),
        q,
    )
    temp_b2a = jax.nn.softmax(jnp.mean(att, axis=3), axis=2)  # (batch, H, La)
    temp_a2b = jax.nn.softmax(jnp.mean(att, axis=2), axis=2)  # (batch, H, Lb)
    A_p = jnp.sum(A.reshape(batch, num_heads, La, dk) * temp_b2a[..., None],
                  axis=2).reshape(batch, -1)
    B_p = jnp.sum(B.reshape(batch, num_heads, Lb, dk) * temp_a2b[..., None],
                  axis=2).reshape(batch, -1)
    return (jnp.concatenate([A_p, B_p], axis=1),
            jnp.mean(temp_b2a, axis=1),
            jnp.mean(temp_a2b, axis=1))


if __name__ == "__main__":
    batch, La, Lb, d, num_heads = 2, 12, 12, 32, 4
    dk = d // num_heads

    key = jax.random.PRNGKey(0)
    kA, kB, kW1, kb1, kW2, kb2, kq = jax.random.split(key, 7)
    A = jax.random.normal(kA, (batch, La, d), jnp.float32)
    B = jax.random.normal(kB, (batch, Lb, d), jnp.float32)
    W1 = jax.random.normal(kW1, (d, d), jnp.float32) / np.sqrt(d)
    b1 = jax.random.normal(kb1, (d,), jnp.float32) * 0.1
    W2 = jax.random.normal(kW2, (d, d), jnp.float32) / np.sqrt(d)
    b2 = jax.random.normal(kb2, (d,), jnp.float32) * 0.1
    # Module inits q to zeros; use small random values for a non-degenerate test.
    q = jax.random.normal(kq, (dk,), jnp.float32) * 0.5

    ref_out = reference(A, B, W1, b1, W2, b2, q, num_heads)

    # Path 1: auto-picked (single) Lb chunk.
    out1 = bilinear_attention(A, B, W1, b1, W2, b2, q, num_heads)
    jax.block_until_ready(out1)
    # Path 2: forced multi-chunk streaming over Lb (exercises the padded /
    # chunked column-sum path and the La group loop).
    out2 = bilinear_attention(A, B, W1, b1, W2, b2, q, num_heads, max_lb_tile=8)
    jax.block_until_ready(out2)

    for got_set in (out1, out2):
        for got, want in zip(got_set, ref_out):
            np.testing.assert_allclose(np.asarray(got), np.asarray(want),
                                       rtol=1e-4, atol=1e-4)
    print("KERNEL_OK")
</pallas_src>

<mosaic_0001>
module attributes {stable_mosaic.version = 11 : i64} {
  func.func @_linear_relu_kernel(%arg0: i32, %arg1: memref<24x32xf32, #tpu.memory_space<vmem>>, %arg2: memref<32x32xf32, #tpu.memory_space<vmem>>, %arg3: memref<1x32xf32, #tpu.memory_space<vmem>>, %arg4: memref<24x32xf32, #tpu.memory_space<vmem>>) attributes {dimension_semantics = [#tpu.dimension_semantics<parallel>], iteration_bounds = array<i64: 1>, scalar_prefetch = 0 : i64, scratch_operands = 0 : i64, tpu.core_type = #tpu.core_type<tc>, window_params = [{transform_indices = @transform_0, window_bounds = array<i64: 24, 32>}, {pipeline_mode = #tpu.pipeline_mode<synchronous>, transform_indices = @transform_1, window_bounds = array<i64: 32, 32>}, {pipeline_mode = #tpu.pipeline_mode<synchronous>, transform_indices = @transform_2, window_bounds = array<i64: 1, 32>}, {transform_indices = @transform_3, window_bounds = array<i64: 24, 32>}]} {
    %c0 = arith.constant 0 : index
    %c0_0 = arith.constant 0 : index
    %0 = vector.load %arg1[%c0, %c0_0] : memref<24x32xf32, #tpu.memory_space<vmem>>, vector<24x32xf32>
    %c0_1 = arith.constant 0 : index
    %c0_2 = arith.constant 0 : index
    %1 = vector.load %arg2[%c0_1, %c0_2] : memref<32x32xf32, #tpu.memory_space<vmem>>, vector<32x32xf32>
    %cst = arith.constant dense<0.000000e+00> : vector<24x32xf32>
    %2 = tpu.matmul %0, %1, %cst {dimension_numbers = #tpu.dot_dimension_numbers<[1], [0], [0], [1], [0, 0, 1, 1], [], []>} : vector<24x32xf32>, vector<32x32xf32>, vector<24x32xf32> -> vector<24x32xf32>
    %c0_3 = arith.constant 0 : index
    %c0_4 = arith.constant 0 : index
    %3 = vector.load %arg3[%c0_3, %c0_4] : memref<1x32xf32, #tpu.memory_space<vmem>>, vector<1x32xf32>
    %4 = vector.broadcast %3 : vector<1x32xf32> to vector<24x32xf32>
    %5 = arith.addf %2, %4 : vector<24x32xf32>
    %cst_5 = arith.constant 0.000000e+00 : f32
    %6 = vector.broadcast %cst_5 : f32 to vector<24x32xf32>
    %7 = arith.maximumf %5, %6 : vector<24x32xf32>
    %c0_6 = arith.constant 0 : index
    %c0_7 = arith.constant 0 : index
    %8 = vector.load %arg4[%c0_6, %c0_7] : memref<24x32xf32, #tpu.memory_space<vmem>>, vector<24x32xf32>
    tpu.vector_store %arg4[%c0_6, %c0_7], %7 {strides = array<i32>} : memref<24x32xf32, #tpu.memory_space<vmem>>, vector<24x32xf32>,
    return
  }
  func.func @transform_0(%arg0: i32) -> (i32, i32) {
    %c0_i32 = arith.constant 0 : i32
    %c0_i32_0 = arith.constant 0 : i32
    return %arg0, %c0_i32 : i32, i32
  }
  func.func @transform_1(%arg0: i32) -> (i32, i32) {
    %c0_i32 = arith.constant 0 : i32
    %c0_i32_0 = arith.constant 0 : i32
    %c0_i32_1 = arith.constant 0 : i32
    return %c0_i32, %c0_i32_0 : i32, i32
  }
  func.func @transform_2(%arg0: i32) -> (i32, i32) {
    %c0_i32 = arith.constant 0 : i32
    %c0_i32_0 = arith.constant 0 : i32
    %c0_i32_1 = arith.constant 0 : i32
    return %c0_i32, %c0_i32_0 : i32, i32
  }
  func.func @transform_3(%arg0: i32) -> (i32, i32) {
    %c0_i32 = arith.constant 0 : i32
    %c0_i32_0 = arith.constant 0 : i32
    return %arg0, %c0_i32 : i32, i32
  }
}

</mosaic_0001>

<bundles_post_ra>
// kernel: tpu_custom_call.1
= control target key start
LH: loop header
LB: loop body
LE: loop exit
PB: predicated region body
PF: predicated region fallthrough
CT: control target
= control target key end

     0   :  { %8 = vsyncpa [#allocation3], 0  ;;  %s337_s0 = inlined_call_operand.hbm [shape: f32[24,32], index: 0, kind: input, shape index: {}]   ;;  %s338_s1 = inlined_call_operand.hbm [shape: f32[32,32], index: 1, kind: input, shape index: {}]   ;;  %s339_s2 = inlined_call_operand.vmem [shape: f32[1,32], index: 2, kind: input, shape index: {}]   ;;  %s340_s3 = inlined_call_operand.hbm [shape: f32[24,32], index: 3, kind: output, shape index: {}]  }
   0x1   :  { %9 = vsyncpa [#allocation6], 0 }
   0x2   :  { %10 = vsyncpa [#allocation4], 0  ;;  %s280_s12 = smov [#allocation2]  }
   0x3   :  { %s16_s13 = sshll.u32 %s280_s12, 4  ;;  %s17_s13 = int_to_ptr.vmem [resolvable:$true] %s16_s13 }
   0x4   :  { %s222_s14 = scalar_lea.vmem %s17_s13, 384  ;;  %p227_p1 = scmp.lt.s32.totalorder %s17_s13, %s17_s13 }
   0x5   :  { %p223_p0 = scmp.ne.s32.totalorder %s17_s13, %s222_s14  ;;  %p228_p2 = scmp.lt.s32.totalorder %s222_s14, %s222_s14 }
   0x7   :  { %p229_p3 = por %p228_p2, %p227_p1 }
   0x9   :  { %p230_p4 = pnand %p229_p3, %p223_p0 }
   0xb   :  { %233 = shalt.err (!%p230_p4)
}
   0xc   :  { %s281_s15 = smov 128   ;;  %s282_s16 = smov 8  }
   0xd   :  { %22 = dma.hbm_to_vmem [thread:$0]  %s337_s0, 384, %s17_s13, [#allocation3], %s281_s15, %s281_s15, %s282_s16  }
   0xe   :  { %s283_s19 = smov [#allocation5]  }
   0xf   :  { %s28_s20 = sshll.u32 %s283_s19, 4  ;;  %s29_s20 = int_to_ptr.vmem [resolvable:$true] %s28_s20 }
  0x10   :  { %s242_s21 = scalar_lea.vmem %s29_s20, 512  ;;  %p247_p6 = scmp.lt.s32.totalorder %s29_s20, %s29_s20 }
  0x11   :  { %p243_p5 = scmp.ne.s32.totalorder %s29_s20, %s242_s21  ;;  %p248_p7 = scmp.lt.s32.totalorder %s242_s21, %s242_s21 }
  0x13   :  { %p249_p8 = por %p248_p7, %p247_p6 }
  0x15   :  { %p250_p9 = pnand %p249_p8, %p243_p5 }
  0x17   :  { %253 = shalt.err (!%p250_p9)
}
  0x18   :  { %34 = dma.hbm_to_vmem [thread:$0]  %s338_s1, 512, %s29_s20, [#allocation6], %s281_s15, %s281_s15, %s282_s16  }
  0x19   :  { %274 = dma.done.wait [#allocation3], 384  }
  0x1a   :  { %275 = vsyncadd [#allocation3], 4294966912 }
  0x1b   :  { %276 = dma.done.wait [#allocation6], 512  }
  0x1c   :  { %277 = vsyncadd [#allocation6], 4294966784  ;;  %v284_v0 = vmov 0.0   ;;  %vm285_vm0 = vmmov 0   ;;  %v49_v1 = vld [vmem:[#allocation5 + $0x18] sm:$0xff]  ;;  %v48_v2 = vld [vmem:[#allocation5 + $0x10] sm:$0xff] }
  0x1d   :  { %199 = vmatprep.subr.mxu1 %v284_v0  ;;  %182 = vmatprep.subr.mxu0 %v284_v0  ;;  %v47_v3 = vld [vmem:[#allocation5 + $0x8] sm:$0xff]  ;;  %v46_v4 = vld [vmem:[#allocation5] sm:$0xff]  ;;  %v44_v5 = vld [vmem:[#allocation2 + $0x8] sm:$0xff]  ;;  %vm57_vm1 = vcmask 261120   ;;  %s286_s24 = smov [#allocation7]  }
  0x1e   :  { %193 = vmatprep.mubr.msk.f32.mxu1 %vm285_vm0, %v284_v0  ;;  %190 = vmatprep.mubr.msk.f32.mxu0 %vm285_vm0, %v284_v0  ;;  %v43_v6 = vld [vmem:[#allocation2] sm:$0xff]  ;;  %v45_v7 = vld [vmem:[#allocation2 + $0x10] sm:$0xff]  ;;  %s158_s25 = sshll.u32 %s286_s24, 4  ;;  %s159_s25 = int_to_ptr.vmem [resolvable:$true] %s158_s25 }
  0x1f   :  { %203 = vmatpush3.msra.mxu1 %v49_v1  ;;  %183 = vmatpush3.msra.mxu0 %v49_v1  ;;  %v171_v8 = vld [vmem:[%s339_s2] ss:$0 sm:$0xff]  ;;  %s254_s2 = scalar_lea.vmem %s159_s25, 384  ;;  %p259_p11 = scmp.lt.s32.totalorder %s159_s25, %s159_s25 }
  0x20   :  { %200 = vmatprep.subr.mxu1 %v284_v0  ;;  %184 = vmatprep.subr.mxu0 %v284_v0  ;;  %p255_p10 = scmp.ne.s32.totalorder %s159_s25, %s254_s2  ;;  %p260_p12 = scmp.lt.s32.totalorder %s254_s2, %s254_s2 }
  0x21   :  { %204 = vmatpush3.msra.mxu1 %v48_v2  ;;  %185 = vmatpush3.msra.mxu0 %v48_v2 }
  0x22   :  { %201 = vmatprep.subr.mxu1 %v284_v0  ;;  %186 = vmatprep.subr.mxu0 %v284_v0  ;;  %p261_p13 = por %p260_p12, %p259_p11 }
  0x23   :  { %205 = vmatpush3.msra.mxu1 %v47_v3  ;;  %187 = vmatpush3.msra.mxu0 %v47_v3 }
  0x24   :  { %202 = vmatprep.subr.mxu1 %v284_v0  ;;  %188 = vmatprep.subr.mxu0 %v284_v0  ;;  %p262_p0 = pnand %p261_p13, %p255_p10 }
  0x25   :  { %206 = vmatpush3.msra.mxu1 %v46_v4  ;;  %189 = vmatpush3.msra.mxu0 %v46_v4 }
  0x26   :  { %194 = vmatmul.mubr.msk.f32.vlgmr.msra.gmra.mxu1 %vm57_vm1, %v44_v5  ;;  %191 = vmatmul.mubr.msk.f32.vlgmr.msra.gmra.mxu0 %vm57_vm1, %v43_v6 }
  0x27   :  { %196 = vmatprep.mubr.msk.f32.mxu1 %vm285_vm0, %v284_v0 }
  0x2a   :  { %197 = vmatmul.mubr.msk.f32.gmra.mxu1 %vm57_vm1, %v45_v7 }
  0xe6   :  { %v138_v9 = vpop.f32.mrf.mxu1  ;;  %v133_v10 = vpop.f32.mrf.mxu0 }
  0xe7   :  { %v139_v11 = vadd.f32 %v171_v8, %v138_v9  ;;  %v134_v12 = vadd.f32 %v171_v8, %v133_v10 }
  0xe8   :  { %v195_v13 = vpop.f32.mrf.mxu1  ;;  %v192_v14 = vpop.f32.mrf.mxu0 }
  0xe9   :  { %v148_v15 = vmax.f32 %v139_v11, 0.0  ;;  %v147_v16 = vmax.f32 %v134_v12, 0.0 }
  0xea   :  { %v143_v17 = vpop.f32.mrf.mxu1 }
  0xeb   :  { %151 = vst.msk [vmem:[#allocation7 + $0x8] sm:$0xff] %vm57_vm1, %v148_v15  ;;  %150 = vst.msk [vmem:[#allocation7] sm:$0xff] %vm57_vm1, %v147_v16  ;;  %v144_v18 = vadd.f32 %v171_v8, %v143_v17 }
  0xec   :  { %v198_v19 = vpop.f32.mrf.mxu1 }
  0xed   :  { %v149_v20 = vmax.f32 %v144_v18, 0.0 }
  0xef   :  { %152 = vst.msk [vmem:[#allocation7 + $0x10] sm:$0xff] %vm57_vm1, %v149_v20 }
  0xf0   :  { %265 = shalt.err (!%p262_p0)
}
  0xf1   :  { %164 = dma.vmem_to_hbm [thread:$0]  %s159_s25, 384, %s340_s3, [#allocation4], %s281_s15, %s281_s15, %s282_s16  }
  0xf2   :  { %278 = dma.done.wait [#allocation4], 384  }
  0xf3   :  { %279 = vsyncadd [#allocation4], 4294966912 }
  0xf4   :  { %168 = vsyncpa [#allocation3], 1 }
  0xf5   :  { %169 = vsyncpa [#allocation6], 1 }
  0xf6   :  { %170 = vsyncpa [#allocation4], 1 }

</bundles_post_ra>
